<compile_context>
chip_gen: v6e
topology: v6e:2x2x1
jax: 0.10.0
libtpu: 0.0.40
codegen_flags: <defaults>
</compile_context>

<pallas_src>
import math
import functools

import jax
import jax.numpy as jnp
from jax.experimental import pallas as pl
from jax.experimental.pallas import tpu as pltpu


def _self_attention_kernel(
    xq_ref,            # (1, tq, D)   query rows of the input (also residual)
    xkv_ref,           # (1, S, D)    full sequence (for K / V)
    wq_ref, bq_ref,    # (1, D, hd), (1, 1, hd)   per-head slices
    wk_ref, bk_ref,
    wv_ref, bv_ref,
    wd_ref,            # (1, hd, D)   per-head rows of the output projection
    bd_ref,            # (1, D)
    gamma_ref, beta_ref,   # (1, D) each (LayerNorm params)
    out_ref,           # (1, tq, D)
    probs_ref,         # (1, 1, tq, S)
    acc_ref,           # (tq, D) f32 scratch: output projection summed over heads
    *,
    head_size: int,
    eps: float,
):
    h = pl.program_id(2)
    num_heads = pl.num_programs(2)

    x_q = xq_ref[0]        # (tq, D)
    x_kv = xkv_ref[0]      # (S, D)
    cdt = x_q.dtype        # MXU input dtype (f32, or bf16 on v6e/v7x)
    scale = 1.0 / math.sqrt(head_size)

    # --- per-head Q/K/V projections: full-D contraction, head-wide output ---
    # 1/sqrt(hd) folded into q (tq*hd multiplies instead of tq*S).
    q = (jnp.dot(x_q, wq_ref[0], preferred_element_type=jnp.float32)
         + bq_ref[0]) * scale                                        # (tq, hd) f32
    k = jnp.dot(x_kv, wk_ref[0], preferred_element_type=jnp.float32) + bk_ref[0]
    v = jnp.dot(x_kv, wv_ref[0], preferred_element_type=jnp.float32) + bv_ref[0]

    # --- scores: q @ k^T as an NT dot_general (no materialized transpose) ---
    scores = jax.lax.dot_general(
        q.astype(cdt), k.astype(cdt),
        dimension_numbers=(((1,), (1,)), ((), ())),
        preferred_element_type=jnp.float32)                          # (tq, S) f32

    # --- softmax over keys (f32); denominator reciprocal on the EUP slot ---
    m = jnp.max(scores, axis=-1, keepdims=True)
    e = jnp.exp(scores - m)
    p = e * pl.reciprocal(jnp.sum(e, axis=-1, keepdims=True), approx=True)
    probs_ref[0, 0] = p.astype(probs_ref.dtype)

    # --- context and its contribution to the dense output projection ---
    ctx = jnp.dot(p.astype(cdt), v.astype(cdt),
                  preferred_element_type=jnp.float32)                # (tq, hd)
    partial = jnp.dot(ctx.astype(cdt), wd_ref[0],
                      preferred_element_type=jnp.float32)            # (tq, D)

    @pl.when(h == 0)
    def _():
        acc_ref[...] = jnp.zeros_like(acc_ref)

    acc_ref[...] += partial

    # --- finalize on the last head: bias, residual, TF-style LayerNorm ---
    @pl.when(h == num_heads - 1)
    def _():
        hidden = acc_ref[...] + bd_ref[...]
        y = hidden + x_q.astype(jnp.float32)
        u = jnp.mean(y, axis=-1, keepdims=True)
        s = jnp.mean((y - u) ** 2, axis=-1, keepdims=True)
        y = (y - u) * jax.lax.rsqrt(s + eps)
        y = gamma_ref[...] * y + beta_ref[...]
        out_ref[0] = y.astype(out_ref.dtype)


def _pick_q_block(S, cap=256):
    """Largest query tile that is the full S or a multiple of 8 dividing S."""
    if S <= cap:
        return S
    for t in (cap, 128, 64, 32, 16, 8):
        if S % t == 0:
            return t
    return S


def _vmem_limit_bytes(S, D, hd, tq, in_itemsize, probs_itemsize):
    """Rough per-step VMEM footprint (double-buffered blocks + temporaries)."""
    blk = (
        2 * tq * D * in_itemsize          # x_q block
        + 2 * S * D * in_itemsize         # x_kv block
        + 2 * 3 * D * hd * in_itemsize    # Wq / Wk / Wv head slices
        + 2 * hd * D * in_itemsize        # Wd head rows
        + 2 * tq * D * 4                  # out block
        + 2 * tq * S * probs_itemsize     # probs block
        + tq * D * 4                      # accumulator scratch
        + 4 * tq * S * 4                  # scores / exp / probs temporaries
        + 3 * (S + tq) * hd * 4           # q / k / v temporaries
    )
    return int(min(100 * 1024 * 1024, max(2 * blk + (8 << 20), 16 << 20)))


def self_attention_forward(x, params, *, num_heads: int, q_block: int = 256,
                           mxu_dtype=None):
    """x: (B, S, D).  Returns (hidden_states (B,S,D), attention_probs (B,H,S,S)).

    `mxu_dtype=jnp.bfloat16` casts x and the four weight matrices for the MXU
    (recommended on v6e/v7x); softmax / LayerNorm stay in f32.
    """
    B, S, D = x.shape
    if D % num_heads != 0:
        raise ValueError(
            f"hidden size ({D}) is not a multiple of num_attention_heads ({num_heads})")
    hd = D // num_heads
    tq = _pick_q_block(S, q_block)
    n_qt = S // tq

    out_dtype = x.dtype
    cdt = jnp.dtype(mxu_dtype) if mxu_dtype is not None else x.dtype
    probs_dtype = cdt

    # One-time host-side re-layout of the parameters so every per-head weight
    # slice is a full trailing block (keeps BlockSpec last-two-dims == full).
    xc = x.astype(cdt)
    wq3 = jnp.transpose(params["wq"].reshape(D, num_heads, hd), (1, 0, 2)).astype(cdt)
    wk3 = jnp.transpose(params["wk"].reshape(D, num_heads, hd), (1, 0, 2)).astype(cdt)
    wv3 = jnp.transpose(params["wv"].reshape(D, num_heads, hd), (1, 0, 2)).astype(cdt)
    wd3 = params["wd"].reshape(num_heads, hd, D).astype(cdt)
    bq3 = params["bq"].reshape(num_heads, 1, hd).astype(jnp.float32)
    bk3 = params["bk"].reshape(num_heads, 1, hd).astype(jnp.float32)
    bv3 = params["bv"].reshape(num_heads, 1, hd).astype(jnp.float32)
    bd = params["bd"].astype(jnp.float32)
    gamma = params["gamma"].astype(jnp.float32)
    beta = params["beta"].astype(jnp.float32)

    kernel = functools.partial(_self_attention_kernel, head_size=hd, eps=1e-12)

    head_w_spec = pl.BlockSpec((1, D, hd), lambda b, qi, h: (h, 0, 0))
    head_b_spec = pl.BlockSpec((1, 1, hd), lambda b, qi, h: (h, 0, 0))
    row_spec = pl.BlockSpec((1, D), lambda b, qi, h: (0, 0))

    grid_spec = pltpu.PrefetchScalarGridSpec(
        num_scalar_prefetch=0,
        grid=(B, n_qt, num_heads),
        in_specs=[
            pl.BlockSpec((1, tq, D), lambda b, qi, h: (b, qi, 0)),   # x (queries)
            pl.BlockSpec((1, S, D), lambda b, qi, h: (b, 0, 0)),     # x (keys/values)
            head_w_spec, head_b_spec,                                # query
            head_w_spec, head_b_spec,                                # key
            head_w_spec, head_b_spec,                                # value
            pl.BlockSpec((1, hd, D), lambda b, qi, h: (h, 0, 0)),    # dense (head rows)
            row_spec,                                                # dense bias
            row_spec, row_spec,                                      # LN gamma, beta
        ],
        out_specs=[
            pl.BlockSpec((1, tq, D), lambda b, qi, h: (b, qi, 0)),
            pl.BlockSpec((1, 1, tq, S), lambda b, qi, h: (b, h, qi, 0)),
        ],
        scratch_shapes=[pltpu.VMEM((tq, D), jnp.float32)],
    )

    out_shapes = (
        jax.ShapeDtypeStruct((B, S, D), out_dtype),
        jax.ShapeDtypeStruct((B, num_heads, S, S), probs_dtype),
    )

    fn = pl.pallas_call(
        kernel,
        out_shape=out_shapes,
        grid_spec=grid_spec,
        compiler_params=pltpu.CompilerParams(
            dimension_semantics=("parallel", "parallel", "arbitrary"),
            vmem_limit_bytes=_vmem_limit_bytes(
                S, D, hd, tq, jnp.dtype(cdt).itemsize, jnp.dtype(probs_dtype).itemsize),
        ),
    )

    return fn(
        xc, xc,
        wq3, bq3,
        wk3, bk3,
        wv3, bv3,
        wd3, bd,
        gamma, beta,
    )


def init_params(key, input_size, hidden_size):
    """Deterministic synthetic parameters.

    PyTorch nn.Linear stores weight as (out, in) and computes x @ W.T + b; here
    we store the already-transposed (in, out) matrices so the kernel does x @ W + b.
    """
    ks = jax.random.split(key, 8)
    scale_qkv = 1.0 / math.sqrt(input_size)
    scale_d = 1.0 / math.sqrt(hidden_size)
    return {
        "wq": jax.random.uniform(ks[0], (input_size, hidden_size), jnp.float32,
                                 -scale_qkv, scale_qkv),
        "bq": jax.random.uniform(ks[1], (1, hidden_size), jnp.float32,
                                 -scale_qkv, scale_qkv),
        "wk": jax.random.uniform(ks[2], (input_size, hidden_size), jnp.float32,
                                 -scale_qkv, scale_qkv),
        "bk": jax.random.uniform(ks[3], (1, hidden_size), jnp.float32,
                                 -scale_qkv, scale_qkv),
        "wv": jax.random.uniform(ks[4], (input_size, hidden_size), jnp.float32,
                                 -scale_qkv, scale_qkv),
        "bv": jax.random.uniform(ks[5], (1, hidden_size), jnp.float32,
                                 -scale_qkv, scale_qkv),
        "wd": jax.random.uniform(ks[6], (hidden_size, hidden_size), jnp.float32,
                                 -scale_d, scale_d),
        "bd": jax.random.uniform(ks[7], (1, hidden_size), jnp.float32,
                                 -scale_d, scale_d),
        "gamma": jnp.ones((1, hidden_size), jnp.float32),
        "beta": jnp.zeros((1, hidden_size), jnp.float32),
    }


def _reference(x, params, num_heads):
    """Pure-JAX reference mirroring the PyTorch forward (eval mode)."""
    B, S, D = x.shape
    hd = D // num_heads
    q = x @ params["wq"] + params["bq"]
    k = x @ params["wk"] + params["bk"]
    v = x @ params["wv"] + params["bv"]

    def split(t):
        return t.reshape(B, S, num_heads, hd).transpose(0, 2, 1, 3)

    q, k, v = split(q), split(k), split(v)
    scores = jnp.einsum("bhqd,bhkd->bhqk", q, k) / math.sqrt(hd)
    probs = jax.nn.softmax(scores, axis=-1)
    ctx = jnp.einsum("bhqk,bhkd->bhqd", probs, v)
    ctx = ctx.transpose(0, 2, 1, 3).reshape(B, S, D)
    hidden = ctx @ params["wd"] + params["bd"]
    y = hidden + x
    u = jnp.mean(y, axis=-1, keepdims=True)
    s = jnp.mean((y - u) ** 2, axis=-1, keepdims=True)
    y = (y - u) / jnp.sqrt(s + 1e-12)
    y = params["gamma"] * y + params["beta"]
    return y, probs


if __name__ == "__main__":
    B, S = 2, 8
    num_heads = 4
    input_size = hidden_size = 32   # residual requires input_size == hidden_size

    key = jax.random.PRNGKey(0)
    k_x, k_p = jax.random.split(key)
    x = jax.random.normal(k_x, (B, S, input_size), dtype=jnp.float32)
    params = init_params(k_p, input_size, hidden_size)

    ref_h, ref_p = _reference(x, params, num_heads)

    # f32 path.
    hidden_states, attn_probs = self_attention_forward(x, params, num_heads=num_heads)
    jax.block_until_ready((hidden_states, attn_probs))
    assert hidden_states.shape == ref_h.shape and attn_probs.shape == ref_p.shape
    assert jnp.allclose(hidden_states, ref_h, atol=5e-3, rtol=5e-3)
    assert jnp.allclose(attn_probs, ref_p, atol=2e-3, rtol=2e-3)

    # bf16-MXU path (production setting on v6e / v7x): loose sanity check.
    h_bf, p_bf = self_attention_forward(x, params, num_heads=num_heads,
                                        mxu_dtype=jnp.bfloat16)
    jax.block_until_ready((h_bf, p_bf))
    assert jnp.allclose(h_bf, ref_h, atol=6e-2, rtol=6e-2)
    assert jnp.allclose(p_bf.astype(jnp.float32), ref_p, atol=2e-2, rtol=2e-2)

    print("KERNEL_OK")
</pallas_src>

<mosaic_0001>
module attributes {stable_mosaic.version = 11 : i64} {
  func.func @_self_attention_kernel(%arg0: i32, %arg1: i32, %arg2: i32, %arg3: memref<1x8x32xf32, #tpu.memory_space<vmem>>, %arg4: memref<1x8x32xf32, #tpu.memory_space<vmem>>, %arg5: memref<1x32x8xf32, #tpu.memory_space<vmem>>, %arg6: memref<1x1x8xf32, #tpu.memory_space<vmem>>, %arg7: memref<1x32x8xf32, #tpu.memory_space<vmem>>, %arg8: memref<1x1x8xf32, #tpu.memory_space<vmem>>, %arg9: memref<1x32x8xf32, #tpu.memory_space<vmem>>, %arg10: memref<1x1x8xf32, #tpu.memory_space<vmem>>, %arg11: memref<1x8x32xf32, #tpu.memory_space<vmem>>, %arg12: memref<1x32xf32, #tpu.memory_space<vmem>>, %arg13: memref<1x32xf32, #tpu.memory_space<vmem>>, %arg14: memref<1x32xf32, #tpu.memory_space<vmem>>, %arg15: memref<1x8x32xf32, #tpu.memory_space<vmem>>, %arg16: memref<1x1x8x8xf32, #tpu.memory_space<vmem>>, %arg17: memref<8x32xf32, #tpu.memory_space<vmem>>) attributes {dimension_semantics = [#tpu.dimension_semantics<parallel>, #tpu.dimension_semantics<parallel>, #tpu.dimension_semantics<arbitrary>], iteration_bounds = array<i64: 2, 1, 4>, scalar_prefetch = 0 : i64, scratch_operands = 1 : i64, tpu.core_type = #tpu.core_type<tc>, window_params = [{transform_indices = @transform_0, window_bounds = array<i64: 1, 8, 32>}, {transform_indices = @transform_1, window_bounds = array<i64: 1, 8, 32>}, {transform_indices = @transform_2, window_bounds = array<i64: 1, 32, 8>}, {transform_indices = @transform_3, window_bounds = array<i64: 1, 1, 8>}, {transform_indices = @transform_4, window_bounds = array<i64: 1, 32, 8>}, {transform_indices = @transform_5, window_bounds = array<i64: 1, 1, 8>}, {transform_indices = @transform_6, window_bounds = array<i64: 1, 32, 8>}, {transform_indices = @transform_7, window_bounds = array<i64: 1, 1, 8>}, {transform_indices = @transform_8, window_bounds = array<i64: 1, 8, 32>}, {pipeline_mode = #tpu.pipeline_mode<synchronous>, transform_indices = @transform_9, window_bounds = array<i64: 1, 32>}, {pipeline_mode = #tpu.pipeline_mode<synchronous>, transform_indices = @transform_10, window_bounds = array<i64: 1, 32>}, {pipeline_mode = #tpu.pipeline_mode<synchronous>, transform_indices = @transform_11, window_bounds = array<i64: 1, 32>}, {transform_indices = @transform_12, window_bounds = array<i64: 1, 8, 32>}, {transform_indices = @transform_13, window_bounds = array<i64: 1, 1, 8, 8>}]} {
    %c0 = arith.constant 0 : index
    %c0_0 = arith.constant 0 : index
    %c0_1 = arith.constant 0 : index
    %0 = vector.load %arg3[%c0, %c0_0, %c0_1] : memref<1x8x32xf32, #tpu.memory_space<vmem>>, vector<1x8x32xf32>
    %1 = vector.shape_cast %0 : vector<1x8x32xf32> to vector<8x32xf32>
    %c0_2 = arith.constant 0 : index
    %c0_3 = arith.constant 0 : index
    %c0_4 = arith.constant 0 : index
    %2 = vector.load %arg4[%c0_2, %c0_3, %c0_4] : memref<1x8x32xf32, #tpu.memory_space<vmem>>, vector<1x8x32xf32>
    %3 = vector.shape_cast %2 : vector<1x8x32xf32> to vector<8x32xf32>
    %c0_5 = arith.constant 0 : index
    %c0_6 = arith.constant 0 : index
    %c0_7 = arith.constant 0 : index
    %4 = vector.load %arg5[%c0_5, %c0_6, %c0_7] : memref<1x32x8xf32, #tpu.memory_space<vmem>>, vector<1x32x8xf32>
    %5 = vector.shape_cast %4 : vector<1x32x8xf32> to vector<32x8xf32>
    %cst = arith.constant dense<0.000000e+00> : vector<8x8xf32>
    %6 = tpu.matmul %1, %5, %cst {dimension_numbers = #tpu.dot_dimension_numbers<[1], [0], [0], [1], [0, 0, 1, 1], [], []>} : vector<8x32xf32>, vector<32x8xf32>, vector<8x8xf32> -> vector<8x8xf32>
    %c0_8 = arith.constant 0 : index
    %c0_9 = arith.constant 0 : index
    %c0_10 = arith.constant 0 : index
    %7 = vector.load %arg6[%c0_8, %c0_9, %c0_10] : memref<1x1x8xf32, #tpu.memory_space<vmem>>, vector<1x1x8xf32>
    %8 = vector.shape_cast %7 : vector<1x1x8xf32> to vector<1x8xf32>
    %9 = vector.broadcast %8 : vector<1x8xf32> to vector<8x8xf32>
    %10 = arith.addf %6, %9 : vector<8x8xf32>
    %cst_11 = arith.constant 0.353553385 : f32
    %11 = vector.broadcast %cst_11 : f32 to vector<8x8xf32>
    %12 = arith.mulf %10, %11 : vector<8x8xf32>
    %c0_12 = arith.constant 0 : index
    %c0_13 = arith.constant 0 : index
    %c0_14 = arith.constant 0 : index
    %13 = vector.load %arg7[%c0_12, %c0_13, %c0_14] : memref<1x32x8xf32, #tpu.memory_space<vmem>>, vector<1x32x8xf32>
    %14 = vector.shape_cast %13 : vector<1x32x8xf32> to vector<32x8xf32>
    %cst_15 = arith.constant dense<0.000000e+00> : vector<8x8xf32>
    %15 = tpu.matmul %3, %14, %cst_15 {dimension_numbers = #tpu.dot_dimension_numbers<[1], [0], [0], [1], [0, 0, 1, 1], [], []>} : vector<8x32xf32>, vector<32x8xf32>, vector<8x8xf32> -> vector<8x8xf32>
    %c0_16 = arith.constant 0 : index
    %c0_17 = arith.constant 0 : index
    %c0_18 = arith.constant 0 : index
    %16 = vector.load %arg8[%c0_16, %c0_17, %c0_18] : memref<1x1x8xf32, #tpu.memory_space<vmem>>, vector<1x1x8xf32>
    %17 = vector.shape_cast %16 : vector<1x1x8xf32> to vector<1x8xf32>
    %18 = vector.broadcast %17 : vector<1x8xf32> to vector<8x8xf32>
    %19 = arith.addf %15, %18 : vector<8x8xf32>
    %c0_19 = arith.constant 0 : index
    %c0_20 = arith.constant 0 : index
    %c0_21 = arith.constant 0 : index
    %20 = vector.load %arg9[%c0_19, %c0_20, %c0_21] : memref<1x32x8xf32, #tpu.memory_space<vmem>>, vector<1x32x8xf32>
    %21 = vector.shape_cast %20 : vector<1x32x8xf32> to vector<32x8xf32>
    %cst_22 = arith.constant dense<0.000000e+00> : vector<8x8xf32>
    %22 = tpu.matmul %3, %21, %cst_22 {dimension_numbers = #tpu.dot_dimension_numbers<[1], [0], [0], [1], [0, 0, 1, 1], [], []>} : vector<8x32xf32>, vector<32x8xf32>, vector<8x8xf32> -> vector<8x8xf32>
    %c0_23 = arith.constant 0 : index
    %c0_24 = arith.constant 0 : index
    %c0_25 = arith.constant 0 : index
    %23 = vector.load %arg10[%c0_23, %c0_24, %c0_25] : memref<1x1x8xf32, #tpu.memory_space<vmem>>, vector<1x1x8xf32>
    %24 = vector.shape_cast %23 : vector<1x1x8xf32> to vector<1x8xf32>
    %25 = vector.broadcast %24 : vector<1x8xf32> to vector<8x8xf32>
    %26 = arith.addf %22, %25 : vector<8x8xf32>
    %cst_26 = arith.constant dense<0.000000e+00> : vector<8x8xf32>
    %27 = tpu.matmul %12, %19, %cst_26 {dimension_numbers = #tpu.dot_dimension_numbers<[1], [1], [0], [0], [0, 0, 1, 0], [], []>} : vector<8x8xf32>, vector<8x8xf32>, vector<8x8xf32> -> vector<8x8xf32>
    %cst_27 = arith.constant dense<0xFF800000> : vector<8xf32>
    %28 = vector.multi_reduction <maximumf>, %27, %cst_27 [1] : vector<8x8xf32> to vector<8xf32>
    %29 = vector.shape_cast %28 : vector<8xf32> to vector<8x1xf32>
    %30 = vector.broadcast %29 : vector<8x1xf32> to vector<8x8xf32>
    %31 = arith.subf %27, %30 : vector<8x8xf32>
    %32 = math.exp %31 : vector<8x8xf32>
    %cst_28 = arith.constant dense<0.000000e+00> : vector<8xf32>
    %33 = vector.multi_reduction <add>, %32, %cst_28 [1] : vector<8x8xf32> to vector<8xf32>
    %34 = vector.shape_cast %33 : vector<8xf32> to vector<8x1xf32>
    %35 = tpu.reciprocal %34 {approx = true} : vector<8x1xf32> -> vector<8x1xf32>
    %36 = vector.broadcast %35 : vector<8x1xf32> to vector<8x8xf32>
    %37 = arith.mulf %32, %36 : vector<8x8xf32>
    %c0_29 = arith.constant 0 : index
    %c0_30 = arith.constant 0 : index
    %c0_31 = arith.constant 0 : index
    %c0_32 = arith.constant 0 : index
    %38 = vector.load %arg16[%c0_29, %c0_30, %c0_31, %c0_32] : memref<1x1x8x8xf32, #tpu.memory_space<vmem>>, vector<1x1x8x8xf32>
    %39 = vector.shape_cast %38 : vector<1x1x8x8xf32> to vector<8x8xf32>
    %40 = vector.shape_cast %37 : vector<8x8xf32> to vector<1x1x8x8xf32>
    tpu.vector_store %arg16[%c0_29, %c0_30, %c0_31, %c0_32], %40 {strides = array<i32>} : memref<1x1x8x8xf32, #tpu.memory_space<vmem>>, vector<1x1x8x8xf32>,
    %cst_33 = arith.constant dense<0.000000e+00> : vector<8x8xf32>
    %41 = tpu.matmul %37, %26, %cst_33 {dimension_numbers = #tpu.dot_dimension_numbers<[1], [0], [0], [1], [0, 0, 1, 1], [], []>} : vector<8x8xf32>, vector<8x8xf32>, vector<8x8xf32> -> vector<8x8xf32>
    %c0_34 = arith.constant 0 : index
    %c0_35 = arith.constant 0 : index
    %c0_36 = arith.constant 0 : index
    %42 = vector.load %arg11[%c0_34, %c0_35, %c0_36] : memref<1x8x32xf32, #tpu.memory_space<vmem>>, vector<1x8x32xf32>
    %43 = vector.shape_cast %42 : vector<1x8x32xf32> to vector<8x32xf32>
    %cst_37 = arith.constant dense<0.000000e+00> : vector<8x32xf32>
    %44 = tpu.matmul %41, %43, %cst_37 {dimension_numbers = #tpu.dot_dimension_numbers<[1], [0], [0], [1], [0, 0, 1, 1], [], []>} : vector<8x8xf32>, vector<8x32xf32>, vector<8x32xf32> -> vector<8x32xf32>
    %c0_i32 = arith.constant 0 : i32
    %45 = arith.cmpi eq, %arg2, %c0_i32 : i32
    %46 = arith.extui %45 : i1 to i32
    %c0_i32_38 = arith.constant 0 : i32
    %47 = arith.cmpi ne, %46, %c0_i32_38 : i32
    scf.if %47 {
      %cst_44 = arith.constant 0.000000e+00 : f32
      %54 = vector.broadcast %cst_44 : f32 to vector<8x32xf32>
      %c0_45 = arith.constant 0 : index
      %c0_46 = arith.constant 0 : index
      %55 = vector.load %arg17[%c0_45, %c0_46] : memref<8x32xf32, #tpu.memory_space<vmem>>, vector<8x32xf32>
      tpu.vector_store %arg17[%c0_45, %c0_46], %54 {strides = array<i32>} : memref<8x32xf32, #tpu.memory_space<vmem>>, vector<8x32xf32>,
    } else {
    }
    %c0_39 = arith.constant 0 : index
    %c0_40 = arith.constant 0 : index
    %48 = vector.load %arg17[%c0_39, %c0_40] : memref<8x32xf32, #tpu.memory_space<vmem>>, vector<8x32xf32>
    %49 = arith.addf %48, %44 : vector<8x32xf32>
    %c0_41 = arith.constant 0 : index
    %c0_42 = arith.constant 0 : index
    %50 = vector.load %arg17[%c0_41, %c0_42] : memref<8x32xf32, #tpu.memory_space<vmem>>, vector<8x32xf32>
    tpu.vector_store %arg17[%c0_41, %c0_42], %49 {strides = array<i32>} : memref<8x32xf32, #tpu.memory_space<vmem>>, vector<8x32xf32>,
    %c3_i32 = arith.constant 3 : i32
    %51 = arith.cmpi eq, %arg2, %c3_i32 : i32
    %52 = arith.extui %51 : i1 to i32
    %c0_i32_43 = arith.constant 0 : i32
    %53 = arith.cmpi ne, %52, %c0_i32_43 : i32
    scf.if %53 {
      %c0_44 = arith.constant 0 : index
      %c0_45 = arith.constant 0 : index
      %54 = vector.load %arg17[%c0_44, %c0_45] : memref<8x32xf32, #tpu.memory_space<vmem>>, vector<8x32xf32>
      %c0_46 = arith.constant 0 : index
      %c0_47 = arith.constant 0 : index
      %55 = vector.load %arg12[%c0_46, %c0_47] : memref<1x32xf32, #tpu.memory_space<vmem>>, vector<1x32xf32>
      %56 = vector.broadcast %55 : vector<1x32xf32> to vector<8x32xf32>
      %57 = arith.addf %54, %56 : vector<8x32xf32>
      %58 = arith.addf %57, %1 : vector<8x32xf32>
      %cst_48 = arith.constant dense<0.000000e+00> : vector<8xf32>
      %59 = vector.multi_reduction <add>, %58, %cst_48 [1] : vector<8x32xf32> to vector<8xf32>
      %60 = vector.shape_cast %59 : vector<8xf32> to vector<8x1xf32>
      %cst_49 = arith.constant 3.200000e+01 : f32
      %61 = vector.broadcast %cst_49 : f32 to vector<8x1xf32>
      %62 = arith.divf %60, %61 : vector<8x1xf32>
      %63 = vector.broadcast %62 : vector<8x1xf32> to vector<8x32xf32>
      %64 = arith.subf %58, %63 : vector<8x32xf32>
      %65 = arith.mulf %64, %64 : vector<8x32xf32>
      %cst_50 = arith.constant dense<0.000000e+00> : vector<8xf32>
      %66 = vector.multi_reduction <add>, %65, %cst_50 [1] : vector<8x32xf32> to vector<8xf32>
      %67 = vector.shape_cast %66 : vector<8xf32> to vector<8x1xf32>
      %cst_51 = arith.constant 3.200000e+01 : f32
      %68 = vector.broadcast %cst_51 : f32 to vector<8x1xf32>
      %69 = arith.divf %67, %68 : vector<8x1xf32>
      %70 = vector.broadcast %62 : vector<8x1xf32> to vector<8x32xf32>
      %71 = arith.subf %58, %70 : vector<8x32xf32>
      %cst_52 = arith.constant 9.99999996E-13 : f32
      %72 = vector.broadcast %cst_52 : f32 to vector<8x1xf32>
      %73 = arith.addf %69, %72 : vector<8x1xf32>
      %74 = math.rsqrt %73 : vector<8x1xf32>
      %75 = vector.broadcast %74 : vector<8x1xf32> to vector<8x32xf32>
      %76 = arith.mulf %71, %75 : vector<8x32xf32>
      %c0_53 = arith.constant 0 : index
      %c0_54 = arith.constant 0 : index
      %77 = vector.load %arg13[%c0_53, %c0_54] : memref<1x32xf32, #tpu.memory_space<vmem>>, vector<1x32xf32>
      %78 = vector.broadcast %77 : vector<1x32xf32> to vector<8x32xf32>
      %79 = arith.mulf %78, %76 : vector<8x32xf32>
      %c0_55 = arith.constant 0 : index
      %c0_56 = arith.constant 0 : index
      %80 = vector.load %arg14[%c0_55, %c0_56] : memref<1x32xf32, #tpu.memory_space<vmem>>, vector<1x32xf32>
      %81 = vector.broadcast %80 : vector<1x32xf32> to vector<8x32xf32>
      %82 = arith.addf %79, %81 : vector<8x32xf32>
      %c0_57 = arith.constant 0 : index
      %c0_58 = arith.constant 0 : index
      %c0_59 = arith.constant 0 : index
      %83 = vector.load %arg15[%c0_57, %c0_58, %c0_59] : memref<1x8x32xf32, #tpu.memory_space<vmem>>, vector<1x8x32xf32>
      %84 = vector.shape_cast %83 : vector<1x8x32xf32> to vector<8x32xf32>
      %85 = vector.shape_cast %82 : vector<8x32xf32> to vector<1x8x32xf32>
      tpu.vector_store %arg15[%c0_57, %c0_58, %c0_59], %85 {strides = array<i32>} : memref<1x8x32xf32, #tpu.memory_space<vmem>>, vector<1x8x32xf32>,
    } else {
    }
    return
  }
  func.func @transform_0(%arg0: i32, %arg1: i32, %arg2: i32) -> (i32, i32, i32) {
    %c0_i32 = arith.constant 0 : i32
    %c0_i32_0 = arith.constant 0 : i32
    return %arg0, %arg1, %c0_i32 : i32, i32, i32
  }
  func.func @transform_1(%arg0: i32, %arg1: i32, %arg2: i32) -> (i32, i32, i32) {
    %c0_i32 = arith.constant 0 : i32
    %c0_i32_0 = arith.constant 0 : i32
    %c0_i32_1 = arith.constant 0 : i32
    return %arg0, %c0_i32, %c0_i32_0 : i32, i32, i32
  }
  func.func @transform_2(%arg0: i32, %arg1: i32, %arg2: i32) -> (i32, i32, i32) {
    %c0_i32 = arith.constant 0 : i32
    %c0_i32_0 = arith.constant 0 : i32
    %c0_i32_1 = arith.constant 0 : i32
    return %arg2, %c0_i32, %c0_i32_0 : i32, i32, i32
  }
  func.func @transform_3(%arg0: i32, %arg1: i32, %arg2: i32) -> (i32, i32, i32) {
    %c0_i32 = arith.constant 0 : i32
    %c0_i32_0 = arith.constant 0 : i32
    %c0_i32_1 = arith.constant 0 : i32
    return %arg2, %c0_i32, %c0_i32_0 : i32, i32, i32
  }
  func.func @transform_4(%arg0: i32, %arg1: i32, %arg2: i32) -> (i32, i32, i32) {
    %c0_i32 = arith.constant 0 : i32
    %c0_i32_0 = arith.constant 0 : i32
    %c0_i32_1 = arith.constant 0 : i32
    return %arg2, %c0_i32, %c0_i32_0 : i32, i32, i32
  }
  func.func @transform_5(%arg0: i32, %arg1: i32, %arg2: i32) -> (i32, i32, i32) {
    %c0_i32 = arith.constant 0 : i32
    %c0_i32_0 = arith.constant 0 : i32
    %c0_i32_1 = arith.constant 0 : i32
    return %arg2, %c0_i32, %c0_i32_0 : i32, i32, i32
  }
  func.func @transform_6(%arg0: i32, %arg1: i32, %arg2: i32) -> (i32, i32, i32) {
    %c0_i32 = arith.constant 0 : i32
    %c0_i32_0 = arith.constant 0 : i32
    %c0_i32_1 = arith.constant 0 : i32
    return %arg2, %c0_i32, %c0_i32_0 : i32, i32, i32
  }
  func.func @transform_7(%arg0: i32, %arg1: i32, %arg2: i32) -> (i32, i32, i32) {
    %c0_i32 = arith.constant 0 : i32
    %c0_i32_0 = arith.constant 0 : i32
    %c0_i32_1 = arith.constant 0 : i32
    return %arg2, %c0_i32, %c0_i32_0 : i32, i32, i32
  }
  func.func @transform_8(%arg0: i32, %arg1: i32, %arg2: i32) -> (i32, i32, i32) {
    %c0_i32 = arith.constant 0 : i32
    %c0_i32_0 = arith.constant 0 : i32
    %c0_i32_1 = arith.constant 0 : i32
    return %arg2, %c0_i32, %c0_i32_0 : i32, i32, i32
  }
  func.func @transform_9(%arg0: i32, %arg1: i32, %arg2: i32) -> (i32, i32) {
    %c0_i32 = arith.constant 0 : i32
    %c0_i32_0 = arith.constant 0 : i32
    %c0_i32_1 = arith.constant 0 : i32
    return %c0_i32, %c0_i32_0 : i32, i32
  }
  func.func @transform_10(%arg0: i32, %arg1: i32, %arg2: i32) -> (i32, i32) {
    %c0_i32 = arith.constant 0 : i32
    %c0_i32_0 = arith.constant 0 : i32
    %c0_i32_1 = arith.constant 0 : i32
    return %c0_i32, %c0_i32_0 : i32, i32
  }
  func.func @transform_11(%arg0: i32, %arg1: i32, %arg2: i32) -> (i32, i32) {
    %c0_i32 = arith.constant 0 : i32
    %c0_i32_0 = arith.constant 0 : i32
    %c0_i32_1 = arith.constant 0 : i32
    return %c0_i32, %c0_i32_0 : i32, i32
  }
  func.func @transform_12(%arg0: i32, %arg1: i32, %arg2: i32) -> (i32, i32, i32) {
    %c0_i32 = arith.constant 0 : i32
    %c0_i32_0 = arith.constant 0 : i32
    return %arg0, %arg1, %c0_i32 : i32, i32, i32
  }
  func.func @transform_13(%arg0: i32, %arg1: i32, %arg2: i32) -> (i32, i32, i32, i32) {
    %c0_i32 = arith.constant 0 : i32
    %c0_i32_0 = arith.constant 0 : i32
    return %arg0, %arg2, %arg1, %c0_i32 : i32, i32, i32, i32
  }
}

</mosaic_0001>

<bundles_post_ra>
// kernel: tpu_custom_call.1
= control target key start
LH: loop header
LB: loop body
LE: loop exit
PB: predicated region body
PF: predicated region fallthrough
CT: control target
= control target key end

     0   :  { %s2153_s0 = inlined_call_operand.vmem [shape: f32[2,8,32], index: 0, kind: input, shape index: {}]   ;;  %s2154_s1 = inlined_call_operand.vmem [shape: f32[2,8,32], index: 1, kind: input, shape index: {}]   ;;  %s2155_s2 = inlined_call_operand.vmem [shape: f32[4,32,8], index: 2, kind: input, shape index: {}]   ;;  %s2156_s3 = inlined_call_operand.vmem [shape: f32[4,1,8], index: 3, kind: input, shape index: {}]   ;;  %s2157_s4 = inlined_call_operand.vmem [shape: f32[4,32,8], index: 4, kind: input, shape index: {}]   ;;  %s2158_s5 = inlined_call_operand.vmem [shape: f32[4,1,8], index: 5, kind: input, shape index: {}]   ;;  %s2159_s6 = inlined_call_operand.vmem [shape: f32[4,32,8], index: 6, kind: input, shape index: {}]   ;;  %s2160_s7 = inlined_call_operand.vmem [shape: f32[4,1,8], index: 7, kind: input, shape index: {}]   ;;  %s2161_s8 = inlined_call_operand.vmem [shape: f32[4,8,32], index: 8, kind: input, shape index: {}]   ;;  %s2162_s9 = inlined_call_operand.vmem [shape: f32[1,32], index: 9, kind: input, shape index: {}]   ;;  %s2163_s10 = inlined_call_operand.vmem [shape: f32[1,32], index: 10, kind: input, shape index: {}]   ;;  %s2164_s11 = inlined_call_operand.vmem [shape: f32[1,32], index: 11, kind: input, shape index: {}]   ;;  %s2165_s12 = inlined_call_operand.hbm [shape: f32[2,8,32], index: 12, kind: output, shape index: {0}]   ;;  %s2166_s13 = inlined_call_operand.hbm [shape: f32[2,4,8,8], index: 13, kind: output, shape index: {1}]  }
   0x1   :  { %2181 = sst [smem:[#allocation18_spill]] %s2153_s0 }
   0x2   :  { %2182 = sst [smem:[#allocation19_spill]] %s2154_s1 }
   0x3   :  { %2183 = sst [smem:[#allocation20_spill]] %s2155_s2 }
   0x4   :  { %2184 = sst [smem:[#allocation21_spill]] %s2156_s3 }
   0x5   :  { %2185 = sst [smem:[#allocation22_spill]] %s2157_s4 }
   0x6   :  { %2186 = sst [smem:[#allocation23_spill]] %s2158_s5 }
   0x7   :  { %2187 = sst [smem:[#allocation24_spill]] %s2162_s9 }
   0x8   :  { %2188 = sst [smem:[#allocation25_spill]] %s2163_s10 }
   0x9   :  { %2189 = sst [smem:[#allocation26_spill]] %s2164_s11 }
   0xa   :  { %2190 = sst [smem:[#allocation27_spill]] %s2165_s12 }
   0xb   :  { %2191 = sst [smem:[#allocation28_spill]] %s2166_s13 }
   0xc   :  { %19 = vsyncpa [#allocation4], 0 }
   0xd   :  { %21 = vsyncpa [#allocation4 + $0x1], 0 }
   0xe   :  { %22 = vsyncpa [#allocation6], 0 }
   0xf   :  { %24 = vsyncpa [#allocation6 + $0x1], 0  ;;  %s1838_s25 = smov 0   ;;  %s1840_s26 = smov 0  }
  0x10   :  { %s1842_s27 = smov 0   ;;  %s1844_s28 = smov 0  }
  0x11   :  { %s1846_s29 = smov 0   ;;  %s1848_s30 = smov 0  }
  0x12   :  { %s1850_s14 = smov 0   ;;  %s1852_s15 = smov 0  }
  0x13   :  { %s1854_s16 = smov 0   ;;  %s1856_s17 = smov 0  }
  0x14   :  { %s1858_s18 = smov 0  }
  0x15 LB: > { %2192 = sst [smem:[#allocation9_spill]] %s1733_s28  ;;  %s1396_s19 = sadd.s32 4294967295, %s1761_s18   ;;  %s1761_s18 = sphi %s1858_s18, %s30_s18   ;;  %s1757_s17 = sphi %s1856_s17, %s2231_s17   ;;  %s1753_s16 = sphi %s1854_s16, %s2230_s16   ;;  %s1749_s15 = sphi %s1852_s15, %s2229_s15   ;;  %s1745_s14 = sphi %s1850_s14, %s2228_s14   ;;  %s1741_s30 = sphi %s1848_s30, %s2227_s30   ;;  %s1737_s29 = sphi %s1846_s29, %s2236_s29   ;;  %s1733_s28 = sphi %s1844_s28, %s2235_s28   ;;  %s1729_s27 = sphi %s1842_s27, %s2234_s27   ;;  %s1725_s26 = sphi %s1840_s26, %s2233_s26   ;;  %s1721_s25 = sphi %s1838_s25, %s2232_s25  }
  0x16   : > { %2193 = sst [smem:[#allocation10_spill]] %s1741_s30  ;;  %s1397_s20 = sadd.s32 4294967294, %s1761_s18  }
  0x17   : > { %2194 = sst [smem:[#allocation11_spill]] %s1753_s16  ;;  %s42_s21 = sadd.s32 1, %s1753_s16 }
  0x18   : > { %2195 = sst [smem:[#allocation12_spill]] %s1757_s17  ;;  %s49_s22 = sadd.s32 1, %s1757_s17 }
  0x19   : > { %p43_p0 = scmp.ge.s32.totalorder %s42_s21, 4  ;;  %s357_s23 = sadd.s32 1, %s1741_s30 }
  0x1a   : > { %p367_p1 = scmp.ne.s32.totalorder %s1741_s30, %s1737_s29  ;;  %p1900_p2 = scmp.eq.s32.totalorder %s1396_s19, 7 }
  0x1b   : > { %s2238_s21 = smov (%p43_p0, %s42_s21), 0  ;;  %s2240_s22 = smov (!%p43_p0, %s49_s22), %s1757_s17 }
  0x1c   : > { %2197 = sst [smem:[#allocation13_spill]] %s2238_s21  ;;  %p1909_p3 = por %p1900_p2, %p367_p1 }
  0x1d   : > { %p373_p4 = scmp.ne.s32.totalorder %s1737_s29, %s1733_s28  ;;  %p51_p5 = scmp.ge.s32.totalorder %s2240_s22, 2 }
  0x1e   : > { %s2198_s13 = scalar_select %p1909_p3, 1, 0 }
  0x1f   : > { %p1915_p6 = scmp.eq.s32.totalorder %s1397_s20, 7  ;;  %s381_s12 = ssub.s32 %s1753_s16, %s2238_s21 }
  0x20   : > { %2199 = sst [smem:[#allocation14_spill]] %s2198_s13  ;;  %s387_s11 = sadd.s32 1, %s1729_s27 }
  0x21   : > { %s2242_s22 = smov (%p51_p5, %s2240_s22), 0  ;;  %p1926_p7 = por %p1915_p6, %p373_p4 }
  0x22   : > { %2201 = sst [smem:[#allocation15_spill]] %s2242_s22  ;;  %p397_p8 = scmp.ne.s32.totalorder %s1729_s27, %s1725_s26 }
  0x23   : > { %s2202_s10 = scalar_select %p1926_p7, 1, 0 }
  0x24   : > { %s352_s28 = ssub.s32 %s1757_s17, %s2242_s22  ;;  %p403_p9 = scmp.ne.s32.totalorder %s1725_s26, %s1721_s25 }
  0x25   : > { %p355_p10 = scmp.eq.s32.totalorder %s352_s28, 0  ;;  %s382_s20 = sor.u32 %s381_s12, %s352_s28 }
  0x26   : > { %p385_p11 = scmp.eq.s32.totalorder %s382_s20, 0  ;;  %p1938_p12 = por %p397_p8, %p1900_p2 }
  0x27   : > { %s1943_s21 = scalar_select %p355_p10, %s1741_s30, %s357_s23  }
  0x28   : > { %s1946_s16 = scalar_select %p385_p11, %s1729_s27, %s387_s11  }
  0x29   : > { %2204 = sst [smem:[#allocation16_spill]] %s1943_s21  ;;  %p1950_p13 = por %p403_p9, %p1915_p6 }
  0x2a   : > { %2205 = sst [smem:[#allocation17_spill]] %s1946_s16  ;;  %p1400_p0 = scmp.ge.s32.totalorder %s1761_s18, 1 }
  0x2b   : > { %s2206_s9 = scalar_select %p1950_p13, 1, 0 }
  0x2c   : > { %p497_p1 = scmp.lt.s32.totalorder %s1761_s18, 9 }
  0x2e   : > { %p498_p4 = pnand %p1400_p0, %p497_p1 }
  0x2f   : > { %s2174_s12 = sand.u32 (!%p498_p4), 1, %s1737_s29   ;;  %p591_p2 = scmp.lt.s32.totalorder (!%p498_p4), %s1745_s14, 3 }
  0x30   : > { %501 = sbr.rel (%p498_p4) target bundleno = 1541 (0x605), region = 68  ;;  %s1960_s11 = sshll.u32 (!%p498_p4), %s2174_s12, 3 }
  0x31   : > { %p580_p5 = scmp.lt.s32.totalorder (!%p498_p4), %s1749_s15, 1  ;;  %s2207_s2 = sld [smem:[#allocation20_spill]] (!%p498_p4) }
  0x32   : > { %s2208_s4 = sld [smem:[#allocation22_spill]] (!%p498_p4)  ;;  %p1422_p6 = scmp.ne.s32.totalorder (!%p498_p4), %s1745_s14, 0 }
  0x33   : > { %s2209_s0 = sld [smem:[#allocation18_spill]] (!%p498_p4) }
  0x34   : > { %s2210_s1 = sld [smem:[#allocation19_spill]] (!%p498_p4) }
  0x35   : > { %v1763_v0 = vmov 0.0   ;;  %vm1764_vm0 = vmmov 0   ;;  %s1970_s28 = scalar_select %p591_p2, %s1745_s14, 3  ;;  %vm632_vm1 = vcmask 261120   ;;  %vm872_vm2 = vcmask 64512  }
  0x36   : > { %1458 = vmatprep.subr.mxu0 %v1763_v0  ;;  %1469 = vmatprep.subr.mxu1 %v1763_v0  ;;  %s581_s23 = scalar_select %p580_p5, %s1749_s15, 1 }
  0x37   : > { %1466 = vmatprep.mubr.msk.f32.mxu0 %vm1764_vm0, %v1763_v0  ;;  %1477 = vmatprep.mubr.msk.f32.mxu1 %vm1764_vm0, %v1763_v0  ;;  %s1974_s24 = sshll.u32 %s1970_s28, 5  ;;  %s2211_s3 = sld [smem:[#allocation21_spill]] }
  0x38   : > { %s595_s12 = scalar_lea.vmem %s2207_s2, %s1974_s24  ;;  %s603_s21 = scalar_lea.vmem %s2208_s4, %s1974_s24 }
  0x39   : > { %v624_v1 = vld [vmem:[%s595_s12 + $0x18] sm:$0xff]  ;;  %v623_v3 = vld [vmem:[%s595_s12 + $0x10] sm:$0xff]  ;;  %s1403_s30 = sshll.u32 %s581_s23, 3  ;;  %v622_v5 = vld [vmem:[%s595_s12 + $0x8] sm:$0xff]  ;;  %s2212_s5 = sld [smem:[#allocation23_spill]] }
  0x3a   : > { %v710_v2 = vld [vmem:[%s603_s21 + $0x18] sm:$0xff]  ;;  %1459 = vmatpush3.msra.mxu0 %v624_v1  ;;  %v709_v4 = vld [vmem:[%s603_s21 + $0x10] sm:$0xff]  ;;  %v708_v6 = vld [vmem:[%s603_s21 + $0x8] sm:$0xff]  ;;  %s586_s2 = scalar_lea.vmem %s2209_s0, %s1403_s30  ;;  %s590_s22 = scalar_lea.vmem %s2210_s1, %s1403_s30 }
  0x3b   : > { %1470 = vmatpush3.msra.mxu1 %v710_v2  ;;  %1460 = vmatprep.subr.mxu0 %v1763_v0  ;;  %v621_v7 = vld [vmem:[%s595_s12] sm:$0xff]  ;;  %s611_s17 = scalar_lea.vmem %s2159_s6, %s1974_s24  ;;  %s1411_s30 = sshll.u32 %s1970_s28, 3 }
  0x3c   : > { %1471 = vmatprep.subr.mxu1 %v1763_v0  ;;  %1461 = vmatpush3.msra.mxu0 %v623_v3  ;;  %v707_v8 = vld [vmem:[%s603_s21] sm:$0xff]  ;;  %v794_v20 = vld [vmem:[%s611_s17 + $0x18] sm:$0xff]  ;;  %v793_v21 = vld [vmem:[%s611_s17 + $0x10] sm:$0xff]  ;;  %s618_s12 = scalar_lea.vmem %s2161_s8, %s1411_s30 }
  0x3d   : > { %1472 = vmatpush3.msra.mxu1 %v709_v4  ;;  %1462 = vmatprep.subr.mxu0 %v1763_v0  ;;  %v1994_v9 = vld [vmem:[%s586_s2] sm:$0xff]  ;;  %s598_s16 = scalar_lea.vmem %s2211_s3, %s1970_s28  ;;  %v792_v22 = vld [vmem:[%s611_s17 + $0x8] sm:$0xff]  ;;  %s614_s2 = scalar_lea.vmem %s2160_s7, %s1970_s28 }
  0x3e   : > { %1473 = vmatprep.subr.mxu1 %v1763_v0  ;;  %1463 = vmatpush3.msra.mxu0 %v622_v5  ;;  %v620_v10 = vld [vmem:[%s590_s22] sm:$0xff] }
  0x3f   : > { %1474 = vmatpush3.msra.mxu1 %v708_v6  ;;  %1464 = vmatprep.subr.mxu0 %v1763_v0  ;;  %s606_s23 = scalar_lea.vmem %s2212_s5, %s1970_s28  ;;  %v1412_v11 = vld [vmem:[%s598_s16] ss:$0 sm:$0xff]  ;;  %s572_s28 = scalar_lea.vmem [#allocation3], %s1960_s11 }
  0x40   : > { %1475 = vmatprep.subr.mxu1 %v1763_v0  ;;  %1465 = vmatpush3.msra.mxu0 %v621_v7  ;;  %v1414_v12 = vld [vmem:[%s606_s23] ss:$0 sm:$0xff]  ;;  %s2178_s23 = sand.u32 1, %s1725_s26  }
  0x41   : > { %1476 = vmatpush3.msra.mxu1 %v707_v8  ;;  %1467 = vmatmul.mubr.msk.f32.vlgmr.msra.gmra.mxu0 %vm632_vm1, %v1994_v9  ;;  %v791_v23 = vld [vmem:[%s611_s17] sm:$0xff]  ;;  %s2044_s19 = sshll.u32 %s2178_s23, 3 }
  0x42   : > { %1478 = vmatmul.mubr.msk.f32.vlgmr.msra.gmra.mxu1 %vm632_vm1, %v620_v10  ;;  %1491 = vmatprep.subr.mxu1 %v1763_v0  ;;  %v1416_v33 = vld [vmem:[%s614_s2] ss:$0 sm:$0xff]  ;;  %s2179_s20 = scalar_lea.vmem [#allocation5], %s2044_s19 }
  0x43   : > { %1493 = vmatprep.mubr.msk.f32.mxu1 %vm1764_vm0, %v1763_v0  ;;  %1480 = vmatprep.subr.mxu0 %v1763_v0  ;;  %v1034_v36 = vld [vmem:[%s618_s12] sm:$0xff] }
  0x44   : > { %1488 = vmatprep.mubr.msk.f32.mxu0 %vm1764_vm0, %v1763_v0  ;;  %1481 = vmatpush3.msra.mxu0 %v794_v20 }
  0x45   : > { %1482 = vmatprep.subr.mxu0 %v1763_v0 }
  0x46   : > { %1483 = vmatpush3.msra.mxu0 %v793_v21 }
  0x47   : > { %1484 = vmatprep.subr.mxu0 %v1763_v0 }
  0x48   : > { %1485 = vmatpush3.msra.mxu0 %v792_v22 }
  0x49   : > { %1486 = vmatprep.subr.mxu0 %v1763_v0 }
  0x4a   : > { %1487 = vmatpush3.msra.mxu0 %v791_v23 }
  0x4b   : > { %1489 = vmatmul.mubr.msk.f32.vlgmr.msra.gmra.mxu0 %vm632_vm1, %v620_v10  ;;  %1501 = vmatprep.subr.mxu0 %v1763_v0 }
  0x4c   : > { %1503 = vmatprep.mubr.msk.f32.mxu0 %vm1764_vm0, %v1763_v0  ;;  %1502 = vmatpush3.msra.mxu0 %v1034_v36 }
 0x101   : > { %v702_v13 = vpop.f32.mrf.mxu0 }
 0x102   : > { %v787_v14 = vpop.f32.mrf.mxu1  ;;  %v703_v15 = vadd.f32 %v1412_v11, %v702_v13 }
 0x103   : > { %v788_v16 = vadd.f32 %v1414_v12, %v787_v14  ;;  %v1468_v17 = vpop.f32.mrf.mxu0 }
 0x104   : > { %v1479_v18 = vpop.f32.mrf.mxu1  ;;  %v706_v19 = vmul.f32 0.35355338, %v703_v15 }
 0x105   : > { %1492 = vmatpush3.xpose.msk.msra.mxu1 %vm872_vm2, %v788_v16 }
 0x106   : > { %1496 = vmatprep.subr.mxu1 %v1763_v0 }
 0x108   : > { %1494 = vmatmul.mubr.msk.f32.vlgmr.msra.gmra.mxu1 %vm872_vm2, %v706_v19 }
 0x109   : > { %1498 = vmatprep.mubr.msk.f32.mxu1 %vm1764_vm0, %v1763_v0 }
 0x10b   : > { %v868_v32 = vpop.f32.mrf.mxu0 }
 0x10c   : > { %v869_v34 = vadd.f32 %v1416_v33, %v868_v32 }
 0x10d   : > { %v1490_v35 = vpop.f32.mrf.mxu0 }
 0x10e   : > { %1497 = vmatpush3.msra.mxu1 %v869_v34 }
 0x1c8   : > { %v945_v24 = vpop.f32.mrf.mxu1 }
 0x1c9   : > { %v949_v25 = vsel %vm872_vm2, %v945_v24, -inf }
 0x1ca   : > { %950 = vmax.xlane.f32.xlu0 %v949_v25  ;;  %v1495_v26 = vpop.f32.mrf.mxu1 }
 0x253   : > { %v951_v27 = vpop.xlane.xlu0 %950 }
 0x254   : > { %v952_v28 = vsub.f32 %v945_v24, %v951_v27 }
 0x256   : > { %v953_v29 = vmul.f32 1.442695, %v952_v28 }
 0x258   : > { %1609 = vpow2.f32 %v953_v29 }
 0x265   : > { %v1610_v30 = vpop.eup %1609 }
 0x266   : > { %v955_v31 = vsel %vm872_vm2, %v1610_v30, 0.0 }
 0x267   : > { %956 = vadd.xlane.f32.xlu0 %v955_v31 }
 0x2f0   : > { %v957_v37 = vpop.xlane.xlu0 %956 }
 0x2f1   : > { %1611 = vrcp.f32 %v957_v37 }
 0x2fe   : > { %v1612_v38 = vpop.eup %1611 }
 0x2ff   : > { %v959_v39 = vmul.f32 %v1612_v38, %v1610_v30 }
 0x301   : > { %960 = vst.msk [vmem:[%s2179_s20] sm:$0xff] %vm872_vm2, %v959_v39  ;;  %1499 = vmatmul.mubr.msk.f32.vlgmr.msra.gmra.mxu1 %vm872_vm2, %v959_v39 }
 0x3c1   : > { %v1030_v40 = vpop.f32.mrf.mxu1 }
 0x3c2   : > { %1504 = vmatmul.mubr.msk.f32.vlgmr.msra.gmra.mxu0 %vm872_vm2, %v1030_v40 }
 0x3c3   : > { %v1500_v41 = vpop.f32.mrf.mxu1 }
 0x480   : > { %1111 = sbr.rel (%p1422_p6) target bundleno = 1159 (0x487), region = 72 }
 0x482   : > { %v1104_v42 = vpop.f32.mrf.mxu0 }
 0x484   : > { %v1505_v43 = vpop.f32.mrf.mxu0 }
 0x485   : > { %v1765_v44 = vmov 0.0  }
 0x486   : > { %1112 = vst.msk [vmem:[#allocation2] sm:$0xff] %vm632_vm1, %v1765_v44 }
 0x487 PF: > { %p1423_p8 = scmp.ne.s32.totalorder %s1745_s14, 3 }
 0x488   : > { %s2213_s22 = sld [smem:[#allocation24_spill]] (!%p1423_p8) }
 0x489   : > { %s2214_s16 = sld [smem:[#allocation25_spill]] (!%p1423_p8) }
 0x48a   : > { %s2215_s17 = sld [smem:[#allocation26_spill]] (!%p1423_p8) }
 0x48c   : > { %1119 = sbr.rel (%p1423_p8) target bundleno = 1489 (0x5d1), region = 76 }
 0x48d   : > { %v1113_v45 = vld [vmem:[#allocation2] sm:$0xff] }
 0x48e   : > { %v1114_v46 = vadd.f32 %v1113_v45, %v1104_v42 }
 0x490   : > { %1115 = vst.msk [vmem:[#allocation2] sm:$0xff] %vm632_vm1, %v1114_v46 }
 0x491   : > { %v1424_v48 = vld [vmem:[%s2213_s22] ss:$0 sm:$0xff] }
 0x492   : > { %v1425_v61 = vld [vmem:[%s2214_s16] ss:$0 sm:$0xff] }
 0x493   : > { %v1426_v63 = vld [vmem:[%s2215_s17] ss:$0 sm:$0xff] }
 0x497   : > { %v1120_v47 = vld [vmem:[#allocation2] sm:$0xff] }
 0x498   : > { %v1128_v49 = vadd.f32 %v1424_v48, %v1120_v47 }
 0x49a   : > { %v1129_v50 = vadd.f32 %v1128_v49, %v1994_v9 }
 0x49c   : > { %v1130_v51 = vsel %vm632_vm1, %v1129_v50, 0.0 }
 0x49d   : > { %1131 = vadd.xlane.f32.xlu0 %v1130_v51 }
 0x526   : > { %v1132_v52 = vpop.xlane.xlu0 %1131 }
 0x527   : > { %v1134_v53 = vmul.f32 0.03125, %v1132_v52 }
 0x529   : > { %v1135_v54 = vsub.f32 %v1129_v50, %v1134_v53 }
 0x52b   : > { %v1136_v55 = vmul.f32 %v1135_v54, %v1135_v54 }
 0x52d   : > { %v1137_v56 = vsel %vm632_vm1, %v1136_v55, 0.0 }
 0x52e   : > { %1138 = vadd.xlane.f32.xlu0 %v1137_v56 }
 0x5b7   : > { %v1139_v57 = vpop.xlane.xlu0 %1138 }
 0x5b8   : > { %v1140_v58 = vmul.f32 0.03125, %v1139_v57 }
 0x5ba   : > { %v1141_v59 = vadd.f32 1e-12, %v1140_v58 }
 0x5bc   : > { %1613 = vrsqrt.f32 %v1141_v59 }
 0x5c9   : > { %v1614_v60 = vpop.eup %1613 }
 0x5ca   : > { %v1143_v62 = vmul.f32 %v1614_v60, %v1135_v54 }
 0x5cc   : > { %v1151_v0 = vmul.f32 %v1425_v61, %v1143_v62 }
 0x5ce   : > { %v1159_v1 = vadd.f32 %v1426_v63, %v1151_v0 }
 0x5d0   : > { %1160 = vst.msk [vmem:[%s572_s28] sm:$0xff] %vm632_vm1, %v1159_v1 }
 0x5d1 PF: > { %s1429_s22 = sshll.u32 %s1749_s15, 7  ;;  %s2217_s2 = sld [smem:[#allocation27_spill]] }
 0x5d2   : > { %s1181_s16 = sshll.u32 %s572_s28, 4  ;;  %s2218_s21 = sand.u32 1, %s1737_s29   ;;  %s1182_s16 = int_to_ptr.vmem [resolvable:$true] %s1181_s16 }
 0x5d3   : > { %s1162_s12 = scalar_lea.sflag [#allocation4], %s2218_s21  ;;  %s1615_s17 = scalar_lea.vmem %s1182_s16, 128 }
 0x5d4   : > { %p1616_p9 = scmp.ne.s32.totalorder %s1182_s16, %s1615_s17  ;;  %s1766_s0 = smov [#allocation3]  }
 0x5d5   : > { %s1619_s1 = sshll.u32 %s1766_s0, 4  ;;  %s1620_s1 = int_to_ptr.vmem [resolvable:$false] %s1619_s1 }
 0x5d6   : > { %p1617_p10 = pnand %p1616_p9, %p1909_p3  ;;  %s1621_s3 = scalar_lea.vmem %s1620_s1, 256 }
 0x5d7   : > { %s1179_s30 = scalar_lea.hbm %s2217_s2, %s1429_s22  ;;  %p1622_p0 = scmp.lt.s32.totalorder %s1182_s16, %s1620_s1 }
 0x5d8   : > { %p1618_p11 = pneg %p1617_p10  ;;  %p1623_p1 = scmp.lt.s32.totalorder %s1621_s3, %s1615_s17 }
 0x5da   : > { %p1624_p4 = por %p1623_p1, %p1622_p0 }
 0x5dc   : > { %p1625_p2 = pnand %p1624_p4, %p1618_p11 }
 0x5de   : > { %1628 = shalt.err (!%p1625_p2)
}
 0x5df   : > { %s1629_s23 = scalar_lea.hbm %s1179_s30, 128  ;;  %s1633_s28 = scalar_lea.hbm %s2217_s2, 256 }
 0x5e0   : > { %p1630_p5 = scmp.ne.s32.totalorder %s1179_s30, %s1629_s23  ;;  %p1634_p9 = scmp.lt.s32.totalorder %s1179_s30, %s2217_s2 }
 0x5e1   : > { %p1635_p10 = scmp.lt.s32.totalorder %s1633_s28, %s1629_s23 }
 0x5e2   : > { %p1631_p6 = pnand %p1630_p5, %p1909_p3 }
 0x5e3   : > { %p1636_p13 = por %p1635_p10, %p1634_p9 }
 0x5e4   : > { %p1632_p8 = pneg %p1631_p6 }
 0x5e6   : > { %p1637_p7 = pnand %p1636_p13, %p1632_p8 }
 0x5e8   : > { %1640 = shalt.err (!%p1637_p7)
}
 0x5e9   : > { %1506 = dma.vmem_to_hbm [thread:$0]  (%p1909_p3), %s1182_s16, 128, %s1179_s30, %s1162_s12  }
 0x5ea   : > { %s1430_s0 = sshll.u32 %s1749_s15, 2  ;;  %s2219_s1 = scalar_lea.vmem [#allocation5], %s2044_s19 }
 0x5eb   : > { %s1197_s3 = sshll.u32 %s2219_s1, 4  ;;  %s1193_s17 = sadd.s32 %s1745_s14, %s1430_s0  ;;  %s1198_s3 = int_to_ptr.vmem [resolvable:$true] %s1197_s3 }
 0x5ec   : > { %s1431_s11 = sshll.u32 %s1193_s17, 7  ;;  %s2220_s23 = sld [smem:[#allocation28_spill]] }
 0x5ed   : > { %s2221_s21 = sand.u32 1, %s1725_s26   ;;  %s1641_s4 = scalar_lea.vmem %s1198_s3, 128 }
 0x5ee   : > { %s1167_s2 = scalar_lea.sflag [#allocation6], %s2221_s21  ;;  %p1642_p7 = scmp.ne.s32.totalorder %s1198_s3, %s1641_s4 }
 0x5ef   : > { %s1767_s24 = smov [#allocation5]  }
 0x5f0   : > { %p1643_p13 = pnand %p1642_p7, %p1938_p12  ;;  %s1645_s5 = sshll.u32 %s1767_s24, 4  ;;  %s1646_s5 = int_to_ptr.vmem [resolvable:$false] %s1645_s5 }
 0x5f1   : > { %s1647_s15 = scalar_lea.vmem %s1646_s5, 256  ;;  %p1648_p3 = scmp.lt.s32.totalorder %s1198_s3, %s1646_s5 }
 0x5f2   : > { %s1195_s28 = scalar_lea.hbm %s2220_s23, %s1431_s11  ;;  %p1644_p11 = pneg %p1643_p13 }
 0x5f3   : > { %p1649_p0 = scmp.lt.s32.totalorder %s1647_s15, %s1641_s4 }
 0x5f5   : > { %p1650_p1 = por %p1649_p0, %p1648_p3 }
 0x5f7   : > { %p1651_p4 = pnand %p1650_p1, %p1644_p11 }
 0x5f9   : > { %1654 = shalt.err (!%p1651_p4)
}
 0x5fa   : > { %s1655_s14 = scalar_lea.hbm %s1195_s28, 128  ;;  %s1659_s16 = scalar_lea.hbm %s2220_s23, 1024 }
 0x5fb   : > { %p1656_p2 = scmp.ne.s32.totalorder %s1195_s28, %s1655_s14  ;;  %p1660_p8 = scmp.lt.s32.totalorder %s1195_s28, %s2220_s23 }
 0x5fc   : > { %p1661_p9 = scmp.lt.s32.totalorder %s1659_s16, %s1655_s14 }
 0x5fd   : > { %p1657_p5 = pnand %p1656_p2, %p1938_p12 }
 0x5fe   : > { %p1662_p10 = por %p1661_p9, %p1660_p8 }
 0x5ff   : > { %p1658_p6 = pneg %p1657_p5 }
 0x601   : > { %p1663_p7 = pnand %p1662_p10, %p1658_p6 }
 0x603   : > { %1666 = shalt.err (!%p1663_p7)
}
 0x604   : > { %1507 = dma.vmem_to_hbm [thread:$0]  (%p1938_p12), %s1198_s3, 128, %s1195_s28, %s1167_s2  }
 0x605 PF: > { %s2222_s4 = sld [smem:[#allocation9_spill]]  ;;  %p1517_p13 = scmp.ge.s32.totalorder %s1761_s18, 2 }
 0x606   : > { %p2223_p11 = scmp.ne.s32.totalorder %s2202_s10, 0 }
 0x608   : > { %p1511_p3 = pnand %p1517_p13, %p2223_p11 }
 0x60a   : > { %p1512_p0 = pneg %p1511_p3 }
 0x60b   : > { %s1209_s5 = sand.u32 1, %s2222_s4  }
 0x60c   : > { %s1210_s1 = scalar_lea.sflag [#allocation4], %s1209_s5 }
 0x60d   : > { %1712 = dma.done.wait (%p1512_p0), %s1210_s1, 128  }
 0x60e   : > { %1714 = vsyncadd (%p1512_p0), %s1210_s1, 4294967168  ;;  %s1218_s17 = sand.u32 1, %s1721_s25   ;;  %p2224_p1 = scmp.ne.s32.totalorder %s2206_s9, 0 }
 0x60f   : > { %s1219_s13 = scalar_lea.sflag [#allocation6], %s1218_s17 }
 0x610   : > { %p1514_p4 = pnand %p1517_p13, %p2224_p1 }
 0x612   : > { %p1515_p2 = pneg %p1514_p4 }
 0x614   : > { %1716 = dma.done.wait (%p1515_p2), %s1219_s13, 128  }
 0x615   : > { %1718 = vsyncadd (%p1515_p2), %s1219_s13, 4294967168  ;;  %s30_s18 = sadd.s32 1, %s1761_s18   ;;  %s2225_s10 = sld [smem:[#allocation17_spill]] }
 0x616   : > { %p27_p12 = scmp.ge.s32.totalorder %s30_s18, 10   ;;  %s2226_s2 = sld [smem:[#allocation10_spill]] }
 0x617   : > { %s2227_s30 = sld [smem:[#allocation16_spill]]  ;;  %s2232_s25 = smov %s1725_s26 }
 0x618   : > { %s2228_s14 = sld [smem:[#allocation11_spill]]  ;;  %s2233_s26 = smov %s1729_s27 }
 0x619   : > { %s2229_s15 = sld [smem:[#allocation12_spill]]  ;;  %s2235_s28 = smov %s1737_s29 }
 0x61a   : > { %s2230_s16 = sld [smem:[#allocation13_spill]]  ;;  %29 = sbr.rel (!%p27_p12) target bundleno = 21 (0x15), region = 152 }
 0x61b   : > { %s2231_s17 = sld [smem:[#allocation15_spill]]  ;;  %s2234_s27 = smov %s2225_s10 }
 0x61c   : > { %s2236_s29 = smov %s2226_s2 }
 0x61f   :  { %1224 = vsyncpa [#allocation4], 1 }
 0x620   :  { %1226 = vsyncpa [#allocation4 + $0x1], 1 }
 0x621   :  { %1227 = vsyncpa [#allocation6], 1 }
 0x622   :  { %1229 = vsyncpa [#allocation6 + $0x1], 1 }

</bundles_post_ra>
